<compile_context>
chip_gen: v7x
topology: tpu7x:2x2x1
jax: 0.10.0
libtpu: 0.0.40
codegen_flags: <defaults>
</compile_context>

<pallas_src>
import functools

import jax
import jax.numpy as jnp
from jax.experimental import pallas as pl
from jax.experimental.pallas import tpu as pltpu


def _round_up(x, m):
    return ((x + m - 1) // m) * m


def _vmem_budget_bytes():
    """Scoped-VMEM budget with headroom, derived from the actual chip."""
    cap = 64 * 1024 * 1024  # conservative default = v7x per-core physical VMEM
    try:
        info = pltpu.get_tpu_info()
        cap = int(getattr(info, "vmem_capacity_bytes", cap) or cap)
    except Exception:
        pass
    # ~48 MiB scoped on v7x (64 MiB physical), ~96 MiB on v5e/v6e (128 MiB):
    # leaves headroom for double-buffering and compiler scratch.
    return (3 * cap) // 4


# ---------------------------------------------------------------------------
# Fused single-pass kernel: one grid step = TB whole batch elements.
# ---------------------------------------------------------------------------
def _fused_kernel(x_ref, wT_ref, b_ref, o_ref, *, inv_n):
    # x_ref:  (TB, N, K)  input slab (full, unpadded feature dim)
    # wT_ref: (K, D)      W^T, resident (constant index_map)
    # b_ref:  (1, D)      bias in f32
    # o_ref:  (TB, N, D)  output slab
    x = x_ref[...]
    tb, n, k = x.shape
    w = wT_ref[...]

    # Per-batch set-axis sum in f32 (safe for bf16 inputs / large N),
    # mean = sum * (1/N) with a host constant (no per-step divide).
    xm = jnp.sum(x.astype(jnp.float32), axis=1) * inv_n                 # (TB, K)
    # Correction b - mean @ W^T; no f32 cast of the weights (MXU accumulates
    # in f32 via preferred_element_type).
    corr = b_ref[...] - jnp.dot(xm.astype(x.dtype), w,
                                preferred_element_type=jnp.float32)     # (TB, D)
    # Main matmul on the packed rows: full sublane / MXU occupancy.
    y = jnp.dot(x.reshape(tb * n, k), w,
                preferred_element_type=jnp.float32)                     # (TB*N, D)
    y = y.reshape(tb, n, -1) + corr[:, None, :]
    o_ref[...] = y.astype(o_ref.dtype)


# ---------------------------------------------------------------------------
# Fallback pass-2 kernel: out = x @ W^T + corr, tiled over N (and D_out).
# ---------------------------------------------------------------------------
def _gamma_kernel(x_ref, wT_ref, corr_ref, o_ref):
    # x_ref: (1, TN, K); wT_ref: (K, TD); corr_ref: (1, 1, TD) f32; o_ref: (1, TN, TD)
    acc = jnp.dot(x_ref[0], wT_ref[...], preferred_element_type=jnp.float32)
    o_ref[0] = (acc + corr_ref[0]).astype(o_ref.dtype)


def perm_equi1_mean(x, weight, bias, *, force_two_pass=False):
    """x: (B, N, D_in); weight: (D_out, D_in) [PyTorch layout]; bias: (D_out,)."""
    B, N, K = x.shape
    D = weight.shape[0]
    dtype = x.dtype
    itemsize = jnp.dtype(dtype).itemsize

    wT = weight.T.astype(dtype)                          # (K, D) MXU operand
    bias_f32 = bias.astype(jnp.float32).reshape(1, D)    # (1, D)
    inv_n = 1.0 / float(N)                               # host constant

    budget = _vmem_budget_bytes()
    big_vmem = budget >= 72 * 1024 * 1024                # v5e / v6e (128 MiB)
    target_rows = 1024 if big_vmem else 512              # packed rows per step

    # ------------------ fused single-pass path ----------------------------
    # Per-step VMEM (bytes) for a slab of `tb` batch elements: double-buffered
    # x/out blocks, resident W^T, plus f32 temporaries inside the kernel body.
    def fused_cost(tb):
        rows = tb * N
        return (2 * rows * K * itemsize       # x block (double-buffered)
                + 2 * rows * D * itemsize     # out block
                + 2 * K * D * itemsize        # W^T
                + rows * K * 4                # f32 cast for the set-sum
                + rows * D * 4                # f32 matmul accumulator
                + 8 * D * 4)                  # bias / corr

    tb = 0
    if not force_two_pass:
        max_tb = max(1, min(B, target_rows // max(N, 1)))
        for cand in range(max_tb, 0, -1):
            if B % cand == 0 and fused_cost(cand) <= budget // 2:
                tb = cand
                break
        if tb > 1 and N % 8 != 0:
            # Packing relies on a layout-free (TB, N, K) -> (TB*N, K) reshape,
            # which needs the set axis sublane-aligned; otherwise one batch
            # element per step.
            tb = 1 if fused_cost(1) <= budget // 2 else 0

    if tb >= 1:
        vmem_limit = int(min(max(fused_cost(tb) + (16 << 20), 32 << 20), budget))
        return pl.pallas_call(
            functools.partial(_fused_kernel, inv_n=inv_n),
            out_shape=jax.ShapeDtypeStruct((B, N, D), dtype),
            grid_spec=pltpu.PrefetchScalarGridSpec(
                num_scalar_prefetch=0,
                grid=(B // tb,),
                in_specs=[
                    pl.BlockSpec((tb, N, K), lambda i: (i, 0, 0)),
                    pl.BlockSpec((K, D), lambda i: (0, 0)),
                    pl.BlockSpec((1, D), lambda i: (0, 0)),
                ],
                out_specs=pl.BlockSpec((tb, N, D), lambda i: (i, 0, 0)),
            ),
            compiler_params=pltpu.CompilerParams(
                dimension_semantics=("parallel",),
                vmem_limit_bytes=vmem_limit),
        )(x, wT, bias_f32)

    # ------------- fallback: XLA-side corr + tiled Pallas matmul -----------
    # corr[b] = bias - mean(x[b], 0) @ W^T : a DMA-bound reduction plus a tiny
    # matmul; plain XLA handles it well and this removes a kernel launch.
    xm = jnp.mean(x, axis=1, dtype=jnp.float32)                         # (B, K)
    corr = bias_f32 - jnp.dot(xm.astype(dtype), wT,
                              preferred_element_type=jnp.float32,
                              precision=jax.lax.Precision.HIGHEST)      # (B, D)
    corr = corr.reshape(B, 1, D)

    # Output-feature tiling when the resident weight slab would blow VMEM.
    if 2 * K * D * itemsize <= budget // 3 or D % 128 != 0:
        TD = D
    else:
        TD = 128
        for cand in (512, 256):
            if D % cand == 0:
                TD = cand
                break
    # TODO(synk): for very large D_in additionally add a K-reduction grid axis
    # ("arbitrary") with an f32 accumulator so the (K, TD) weight block stays
    # bounded as well.

    tn_cap = 1024 if big_vmem else 512
    if N <= tn_cap:
        TN, N_p = N, N
    else:
        TN = tn_cap

        def step_cost(tn):
            return (2 * tn * K * itemsize + 2 * tn * TD * itemsize
                    + 2 * K * TD * itemsize + tn * TD * 4 + 8 * D * 4)

        while TN > 8 and step_cost(TN) > budget:
            TN //= 2
        N_p = _round_up(N, TN)

    # Zero-pad only the set axis (padded rows only produce output rows that
    # are sliced off; features stay unpadded).
    x_p = jnp.pad(x, ((0, 0), (0, N_p - N), (0, 0))) if N_p != N else x

    est = (2 * TN * K * itemsize + 2 * TN * TD * itemsize
           + 2 * K * TD * itemsize + TN * TD * 4 + 8 * D * 4)
    vmem_limit = int(min(max(est + (16 << 20), 32 << 20), budget))

    # NOTE: if a profile shows exposed DMA on the x stream, sweep
    # pipeline_mode=pl.Buffered(3) on the x BlockSpec.
    out_p = pl.pallas_call(
        _gamma_kernel,
        out_shape=jax.ShapeDtypeStruct((B, N_p, D), dtype),
        grid_spec=pltpu.PrefetchScalarGridSpec(
            num_scalar_prefetch=0,
            grid=(B, D // TD, N_p // TN),
            in_specs=[
                pl.BlockSpec((1, TN, K), lambda b, d, n: (b, n, 0)),
                pl.BlockSpec((K, TD), lambda b, d, n: (0, d)),
                pl.BlockSpec((1, 1, TD), lambda b, d, n: (b, 0, d)),
            ],
            out_specs=pl.BlockSpec((1, TN, TD), lambda b, d, n: (b, n, d)),
        ),
        compiler_params=pltpu.CompilerParams(
            dimension_semantics=("parallel", "parallel", "parallel"),
            vmem_limit_bytes=vmem_limit),
    )(x_p, wT, corr)

    return out_p[:, :N, :] if N_p != N else out_p


if __name__ == "__main__":
    key = jax.random.PRNGKey(0)
    kx, kw, kb, kx2, kw2, kb2 = jax.random.split(key, 6)

    # --- main test: typical small DeepSets shapes (fused single-pass path) ---
    B, N, D_in, D_out = 2, 8, 32, 32
    x = jax.random.normal(kx, (B, N, D_in), dtype=jnp.float32)
    bound = 1.0 / (D_in ** 0.5)
    weight = jax.random.uniform(kw, (D_out, D_in), jnp.float32, -bound, bound)
    bias = jax.random.uniform(kb, (D_out,), jnp.float32, -bound, bound)

    fn = jax.jit(perm_equi1_mean)
    out = jax.block_until_ready(fn(x, weight, bias))
    ref = (x - jnp.mean(x, axis=1, keepdims=True)) @ weight.T + bias
    assert out.shape == (B, N, D_out)
    err = float(jnp.max(jnp.abs(out - ref)))
    assert jnp.allclose(out, ref, atol=1e-3, rtol=1e-3), err

    # --- secondary test: exercise the tiled two-pass fallback (set-axis
    #     tiling + padding, unaligned feature dims, XLA-side correction) ---
    B2, N2, K2, D2 = 2, 1300, 24, 96
    x2 = jax.random.normal(kx2, (B2, N2, K2), dtype=jnp.float32)
    bound2 = 1.0 / (K2 ** 0.5)
    w2 = jax.random.uniform(kw2, (D2, K2), jnp.float32, -bound2, bound2)
    b2 = jax.random.uniform(kb2, (D2,), jnp.float32, -bound2, bound2)

    fn2 = jax.jit(functools.partial(perm_equi1_mean, force_two_pass=True))
    out2 = jax.block_until_ready(fn2(x2, w2, b2))
    ref2 = (x2 - jnp.mean(x2, axis=1, keepdims=True)) @ w2.T + b2
    assert out2.shape == (B2, N2, D2)
    err2 = float(jnp.max(jnp.abs(out2 - ref2)))
    assert jnp.allclose(out2, ref2, atol=1e-3, rtol=1e-3), err2

    print("KERNEL_OK")
</pallas_src>

<mosaic_0001>
module attributes {stable_mosaic.version = 11 : i64} {
  func.func @_fused_kernel(%arg0: i32, %arg1: memref<2x8x32xf32, #tpu.memory_space<vmem>>, %arg2: memref<32x32xf32, #tpu.memory_space<vmem>>, %arg3: memref<1x32xf32, #tpu.memory_space<vmem>>, %arg4: memref<2x8x32xf32, #tpu.memory_space<vmem>>) attributes {dimension_semantics = [#tpu.dimension_semantics<parallel>], iteration_bounds = array<i64: 1>, scalar_prefetch = 0 : i64, scratch_operands = 0 : i64, tpu.core_type = #tpu.core_type<tc>, window_params = [{transform_indices = @transform_0, window_bounds = array<i64: 2, 8, 32>}, {pipeline_mode = #tpu.pipeline_mode<synchronous>, transform_indices = @transform_1, window_bounds = array<i64: 32, 32>}, {pipeline_mode = #tpu.pipeline_mode<synchronous>, transform_indices = @transform_2, window_bounds = array<i64: 1, 32>}, {transform_indices = @transform_3, window_bounds = array<i64: 2, 8, 32>}]} {
    %c0 = arith.constant 0 : index
    %c0_0 = arith.constant 0 : index
    %c0_1 = arith.constant 0 : index
    %0 = vector.load %arg1[%c0, %c0_0, %c0_1] : memref<2x8x32xf32, #tpu.memory_space<vmem>>, vector<2x8x32xf32>
    %c0_2 = arith.constant 0 : index
    %c0_3 = arith.constant 0 : index
    %1 = vector.load %arg2[%c0_2, %c0_3] : memref<32x32xf32, #tpu.memory_space<vmem>>, vector<32x32xf32>
    %cst = arith.constant dense<0.000000e+00> : vector<2x32xf32>
    %2 = vector.multi_reduction <add>, %0, %cst [1] : vector<2x8x32xf32> to vector<2x32xf32>
    %cst_4 = arith.constant 1.250000e-01 : f32
    %3 = vector.broadcast %cst_4 : f32 to vector<2x32xf32>
    %4 = arith.mulf %2, %3 : vector<2x32xf32>
    %c0_5 = arith.constant 0 : index
    %c0_6 = arith.constant 0 : index
    %5 = vector.load %arg3[%c0_5, %c0_6] : memref<1x32xf32, #tpu.memory_space<vmem>>, vector<1x32xf32>
    %cst_7 = arith.constant dense<0.000000e+00> : vector<2x32xf32>
    %6 = tpu.matmul %4, %1, %cst_7 {dimension_numbers = #tpu.dot_dimension_numbers<[1], [0], [0], [1], [0, 0, 1, 1], [], []>} : vector<2x32xf32>, vector<32x32xf32>, vector<2x32xf32> -> vector<2x32xf32>
    %7 = vector.broadcast %5 : vector<1x32xf32> to vector<2x32xf32>
    %8 = arith.subf %7, %6 : vector<2x32xf32>
    %9 = vector.shape_cast %0 : vector<2x8x32xf32> to vector<16x32xf32>
    %cst_8 = arith.constant dense<0.000000e+00> : vector<16x32xf32>
    %10 = tpu.matmul %9, %1, %cst_8 {dimension_numbers = #tpu.dot_dimension_numbers<[1], [0], [0], [1], [0, 0, 1, 1], [], []>} : vector<16x32xf32>, vector<32x32xf32>, vector<16x32xf32> -> vector<16x32xf32>
    %11 = vector.shape_cast %10 : vector<16x32xf32> to vector<2x8x32xf32>
    %12 = vector.shape_cast %8 : vector<2x32xf32> to vector<2x1x32xf32>
    %13 = vector.broadcast %12 : vector<2x1x32xf32> to vector<2x8x32xf32>
    %14 = arith.addf %11, %13 : vector<2x8x32xf32>
    %c0_9 = arith.constant 0 : index
    %c0_10 = arith.constant 0 : index
    %c0_11 = arith.constant 0 : index
    %15 = vector.load %arg4[%c0_9, %c0_10, %c0_11] : memref<2x8x32xf32, #tpu.memory_space<vmem>>, vector<2x8x32xf32>
    tpu.vector_store %arg4[%c0_9, %c0_10, %c0_11], %14 {strides = array<i32>} : memref<2x8x32xf32, #tpu.memory_space<vmem>>, vector<2x8x32xf32>,
    return
  }
  func.func @transform_0(%arg0: i32) -> (i32, i32, i32) {
    %c0_i32 = arith.constant 0 : i32
    %c0_i32_0 = arith.constant 0 : i32
    %c0_i32_1 = arith.constant 0 : i32
    return %arg0, %c0_i32, %c0_i32_0 : i32, i32, i32
  }
  func.func @transform_1(%arg0: i32) -> (i32, i32) {
    %c0_i32 = arith.constant 0 : i32
    %c0_i32_0 = arith.constant 0 : i32
    %c0_i32_1 = arith.constant 0 : i32
    return %c0_i32, %c0_i32_0 : i32, i32
  }
  func.func @transform_2(%arg0: i32) -> (i32, i32) {
    %c0_i32 = arith.constant 0 : i32
    %c0_i32_0 = arith.constant 0 : i32
    %c0_i32_1 = arith.constant 0 : i32
    return %c0_i32, %c0_i32_0 : i32, i32
  }
  func.func @transform_3(%arg0: i32) -> (i32, i32, i32) {
    %c0_i32 = arith.constant 0 : i32
    %c0_i32_0 = arith.constant 0 : i32
    %c0_i32_1 = arith.constant 0 : i32
    return %arg0, %c0_i32, %c0_i32_0 : i32, i32, i32
  }
}

</mosaic_0001>

<bundles_post_ra>
// kernel: perm_equi1_mean.1
= control target key start
LH: loop header
LB: loop body
LE: loop exit
PB: predicated region body
PF: predicated region fallthrough
CT: control target
= control target key end

     0   :  { %v338_v3 = vmov 0.0|0.0   ;;  %vm339_vm0 = vmmov 0   ;;  %v340_v6 = vmov 0.0   ;;  %vm21_vm1 = vcmask 261120   ;;  %s405_s0 = inlined_call_operand.vmem [shape: f32[2,8,32], index: 0, kind: input, shape index: {}]   ;;  %s406_s1 = inlined_call_operand.vmem [shape: f32[32,32], index: 1, kind: input, shape index: {}]   ;;  %s407_s2 = inlined_call_operand.vmem [shape: f32[1,32], index: 2, kind: input, shape index: {}]   ;;  %s408_s3 = inlined_call_operand.hbm [shape: f32[2,8,32], index: 3, kind: output, shape index: {}]  }
   0x1   :  { %v17_v0 = vld [vmem:[%s406_s1] sm:$0xff]  ;;  %v18_v1 = vld [vmem:[%s406_s1 + $0x8] sm:$0xff]  ;;  %v19_v2 = vld [vmem:[%s406_s1 + $0x10] sm:$0xff]  ;;  %293 = vmatprep.subr.bf16.mxu0 %v338_v3  ;;  %279 = vmatprep.mubr.msk.f32.mxu0 %vm339_vm0, %v340_v6 }
   0x2   :  { %v294_v4 = vpack.c.bf16 %v18_v1, %v17_v0  ;;  %v20_v5 = vld [vmem:[%s406_s1 + $0x18] sm:$0xff]  ;;  %v15_v7 = vld [vmem:[%s405_s0] sm:$0xff]  ;;  %v16_v8 = vld [vmem:[%s405_s0 + $0x8] sm:$0xff] }
   0x3   :  { %v22_v9 = vsel %vm21_vm1, %v15_v7, 0.0  ;;  %v29_v10 = vsel %vm21_vm1, %v16_v8, 0.0  ;;  %290 = vmatprep.mubr.msk.f32.mxu1 %vm21_vm1, %v15_v7 }
   0x4   :  { %8 = vsyncpa [#allocation3], 0  ;;  %295 = vmatpush3.bf16.msra.mxu0 %v294_v4  ;;  %v297_v11 = vpack.c.bf16 %v20_v5, %v19_v2  ;;  %300 = vmatprep.subr.bf16.mxu1 %v294_v4  ;;  %v23_v12 = vrot.slane %v22_v9, 4  ;;  %v30_v13 = vrot.slane %v29_v10, 4  ;;  %vm41_vm2 = vcmask 1041409   ;;  %s342_s24 = smov [#allocation2]  }
   0x5   :  { %296 = vmatprep.subr.bf16.mxu0 %v338_v3  ;;  %302 = vmatpush3.bf16.msra.mxu1 %v294_v4  ;;  %v341_v27 = vmov 1966171168   ;;  %v207_v29 = vlaneseq  ;;  %v257_v34 = vld [vmem:[%s407_s2] ss:$0 sm:$0xff]  ;;  %s245_s25 = sshll.u32 %s342_s24, 4  ;;  %s246_s25 = int_to_ptr.vmem [resolvable:$true] %s245_s25 }
   0x6   :  { %v24_v14 = vadd.f32 %v23_v12, %v22_v9  ;;  %v31_v15 = vadd.f32 %v30_v13, %v29_v10  ;;  %304 = vmatprep.subr.bf16.mxu1 %v297_v11  ;;  %v205_v28 = vunpack.c.l.s4 %v341_v27  ;;  %s314_s2 = scalar_lea.vmem %s246_s25, 256  ;;  %p319_p1 = scmp.lt.s32.totalorder %s246_s25, %s246_s25 }
   0x7   :  { %v208_v33 = vshrl.u32 %v207_v29, 7  ;;  %p315_p0 = scmp.ne.s32.totalorder %s246_s25, %s314_s2  ;;  %p320_p2 = scmp.lt.s32.totalorder %s314_s2, %s314_s2 }
   0x8   :  { %298 = vmatpush3.bf16.msra.mxu0 %v297_v11  ;;  %v25_v16 = vrot.slane %v24_v14, 2  ;;  %v32_v17 = vrot.slane %v31_v15, 2  ;;  %v206_v32 = vunpack.c.0.s8 %v205_v28 }
   0x9   :  { %306 = vmatpush3.bf16.msra.mxu1 %v297_v11  ;;  %v228_v40 = vsub.s32 0, %v208_v33  ;;  %p321_p3 = por %p320_p2, %p319_p1 }
   0xa   :  { %v26_v18 = vadd.f32 %v25_v16, %v24_v14  ;;  %v33_v19 = vadd.f32 %v32_v17, %v31_v15  ;;  %v209_v35 = vsub.s32 %v206_v32, %v208_v33 }
   0xb   :  { %p322_p4 = pnand %p321_p3, %p315_p0 }
   0xc   :  { %v27_v20 = vrot.slane %v26_v18, 1  ;;  %v34_v21 = vrot.slane %v33_v19, 1  ;;  %291 = vmatmul.mubr.msk.f32.vlgmr.msra.gmra.mrb[0].mxu1 %vm21_vm1, %v16_v8 }
   0xe   :  { %v28_v22 = vadd.f32 %v27_v20, %v26_v18  ;;  %v35_v23 = vadd.f32 %v34_v21, %v33_v19 }
  0x10   :  { %v36_v24 = vmul.f32 0.125, %v28_v22  ;;  %v37_v25 = vmul.f32 0.125, %v35_v23 }
  0x12   :  { %v42_v26 = vsel %vm41_vm2, %v37_v25, %v36_v24 }
  0x13   :  { %280 = vmatmul.mubr.msk.f32.vlgmr.msra.gmra.mrb[0].mxu0 %vm21_vm1, %v42_v26 }
  0xdf   :  { %v292_v30 = vpop.f32.mrb[0].mxu1 }
  0xe0   :  { %v194_v31 = vpop.f32.mrb[1].mxu1 }
  0xe6   :  { %v111_v36 = vpop.f32.mrb[0].mxu0 }
  0xe7   :  { %v121_v37 = vsub.f32 %v257_v34, %v111_v36  ;;  %v281_v38 = vpop.f32.mrb[1].mxu0 }
  0xe9   :  { %v210_v39 = vrot.slane %v121_v37, %v209_v35 }
  0xeb   :  { %v211_v41 = vcombine.high %v210_v39, %v210_v39  ;;  %v218_v42 = vrot.slane %v210_v39, %v209_v35 }
  0xed   :  { %v225_v43 = vrot.slane %v211_v41, %v209_v35  ;;  %v229_v44 = vrot.slane %v218_v42, %v228_v40 }
  0xef   :  { %v233_v45 = vrot.slane %v225_v43, %v228_v40  ;;  %v236_v46 = vadd.f32 %v229_v44, %v194_v31 }
  0xf1   :  { %v237_v47 = vadd.f32 %v292_v30, %v233_v45  ;;  %238 = vst.msk [vmem:[#allocation2] sm:$0xff] %vm21_vm1, %v236_v46 }
  0xf3   :  { %239 = vst.msk [vmem:[#allocation2 + $0x8] sm:$0xff] %vm21_vm1, %v237_v47 }
  0xf4   :  { %325 = shalt.err (!%p322_p4)
}
  0xf5   :  { %s326_s28 = scalar_lea.hbm %s408_s3, 256 }
  0xf6   :  { %p327_p5 = scmp.ne.s32.totalorder %s408_s3, %s326_s28  ;;  %p330_p6 = scmp.lt.u32.totalorder %s326_s28, %s408_s3 }
  0xf8   :  { %p332_p7 = pnand %p330_p6, %p327_p5 }
  0xfa   :  { %335 = shalt.err (!%p332_p7)
}
  0xfb   :  { %s343_s6 = smov 128   ;;  %s344_s7 = smov 8  }
  0xfc   :  { %251 = dma.vmem_to_hbm [thread:$0]  %s246_s25, 256, %s408_s3, [#allocation3], %s343_s6, %s343_s6, %s344_s7  }
  0xfd   :  { %336 = dma.done.wait [#allocation3], 256  }
  0xfe   :  { %337 = vsyncadd [#allocation3], 4294967040 }
  0xff   :  { %255 = vsyncpa [#allocation3], 1 }

</bundles_post_ra>
